<compile_context>
chip_gen: v6e
topology: v6e:2x2x1
jax: 0.10.0
libtpu: 0.0.40
codegen_flags: <defaults>
</compile_context>

<pallas_src>
import functools

import jax
import jax.numpy as jnp
import numpy as np
from jax.experimental import pallas as pl
from jax.experimental.pallas import tpu as pltpu

_LANE = 128  # lane width; thresholds / TP output padded to this for unmasked stores


def _ar_tp_kernel(ps_ref, pe_ref, ls_ref, le_ref, thr_ref, out_ref, *, fps):
    # ps/pe: (BB, 1, P) frames; ls/le: (BB, L, 1) seconds; thr: (1, 1, LANE); out: (BB, LANE)
    a_min = ps_ref[...] / fps                              # (BB, 1, P)  proposals -> seconds
    a_max = pe_ref[...] / fps                              # (BB, 1, P)
    b_min = ls_ref[...]                                    # (BB, L, 1)
    b_max = le_ref[...]                                    # (BB, L, 1)

    # iou_with_anchors, broadcast over (videos, labels, proposals)
    len_a = a_max - a_min                                  # (BB, 1, P)
    len_b = b_max - b_min                                  # (BB, L, 1)
    int_min = jnp.maximum(a_min, b_min)                    # (BB, L, P)
    int_max = jnp.minimum(a_max, b_max)                    # (BB, L, P)
    inter = jnp.maximum(int_max - int_min, 0.0)            # (BB, L, P)
    union = (len_a + len_b) - inter                        # (BB, L, P)
    # Exact division (not approx reciprocal): IoUs feed a strict '>' threshold compare.
    iou = inter / union                                    # (BB, L, P)

    iou_max = jnp.max(iou, axis=-1, keepdims=True)         # (BB, L, 1)  == ious.max(dim=0)
    hits = (iou_max > thr_ref[...]).astype(jnp.float32)    # (BB, L, LANE)
    out_ref[...] = jnp.sum(hits, axis=1)                   # (BB, LANE) lane-dense TP


def ar_values(prop_start, prop_end, lab_start, lab_end, thresholds, *, fps=25.0, block_b=8):
    B_pad, _, P = prop_start.shape
    L = lab_start.shape[1]
    t_lanes = thresholds.shape[-1]
    BB = block_b
    assert B_pad % BB == 0, "batch must be padded to a multiple of the video block"
    kernel = functools.partial(_ar_tp_kernel, fps=fps)
    return pl.pallas_call(
        kernel,
        out_shape=jax.ShapeDtypeStruct((B_pad, t_lanes), jnp.float32),
        grid_spec=pltpu.PrefetchScalarGridSpec(
            num_scalar_prefetch=0,
            grid=(B_pad // BB,),
            in_specs=[
                pl.BlockSpec((BB, 1, P), lambda b: (b, 0, 0)),
                pl.BlockSpec((BB, 1, P), lambda b: (b, 0, 0)),
                pl.BlockSpec((BB, L, 1), lambda b: (b, 0, 0)),
                pl.BlockSpec((BB, L, 1), lambda b: (b, 0, 0)),
                pl.BlockSpec((1, 1, t_lanes), lambda b: (0, 0, 0)),  # resident (const map)
            ],
            out_specs=pl.BlockSpec((BB, t_lanes), lambda b: (b, 0)),
        ),
        compiler_params=pltpu.CompilerParams(dimension_semantics=("parallel",)),
    )(prop_start, prop_end, lab_start, lab_end, thresholds)


def average_recall(proposals, labels, n_proposals=100, iou_thresholds=None, fps=25.0,
                   block_b=8):
    """proposals: (B, P, 3) float32 (cols: score, start_frame, end_frame)
       labels:    (B, L, 2) float32 (start_sec, end_sec).
       Returns (AR scalar, per-video (B, T, 2) TP/FN values)."""
    if iou_thresholds is None:
        iou_thresholds = [0.5, 0.55, 0.6, 0.65, 0.7, 0.75, 0.8, 0.85, 0.9, 0.95]
    B, P, _ = proposals.shape
    L = labels.shape[1]
    T = len(iou_thresholds)

    # proposals[:n_proposals] expressed as a mask (padded proposals get IoU exactly 0,
    # so they never win the max and never cross a positive threshold).
    valid = (jnp.arange(P) < n_proposals)[None, :]
    ps = jnp.where(valid, proposals[:, :, 1], -1e9).astype(jnp.float32)   # (B, P)
    pe = jnp.where(valid, proposals[:, :, 2], -1e9).astype(jnp.float32)   # (B, P)
    ls = labels[:, :, 0].astype(jnp.float32)                              # (B, L)
    le = labels[:, :, 1].astype(jnp.float32)                              # (B, L)

    # Pad the batch to a multiple of the per-step video block. BB=8 keeps the in-kernel
    # (BB, L, P) broadcast intermediates comfortably inside the 64-vreg budget (no spill)
    # while amortizing fixed step overhead. Padded videos produce IoU == 0 (sliced off).
    # For large B on v7x keep B_pad // BB >= 2 so both TensorCores get grid steps.
    BB = block_b
    B_pad = -(-B // BB) * BB
    if B_pad != B:
        r = B_pad - B
        ps = jnp.pad(ps, ((0, r), (0, 0)), constant_values=-1e9)
        pe = jnp.pad(pe, ((0, r), (0, 0)), constant_values=-1e9)
        ls = jnp.pad(ls, ((0, r), (0, 0)), constant_values=0.0)
        le = jnp.pad(le, ((0, r), (0, 0)), constant_values=1.0)   # len_b > 0 -> no 0/0

    # Thresholds on the lane axis, padded to full lane width with an impossible
    # threshold (> 1) so padded lanes count zero TP and get sliced off below.
    thr = jnp.full((1, 1, _LANE), 2.0, jnp.float32)
    thr = thr.at[0, 0, :T].set(jnp.asarray(iou_thresholds, jnp.float32))

    tp_pad = ar_values(ps.reshape(B_pad, 1, P), pe.reshape(B_pad, 1, P),
                       ls.reshape(B_pad, L, 1), le.reshape(B_pad, L, 1),
                       thr, fps=fps, block_b=BB)                          # (B_pad, LANE)
    tp = tp_pad[:B, :T]                                                   # (B, T)
    values = jnp.stack([tp, jnp.float32(L) - tp], axis=-1)                # (B, T, 2)
    values_sum = values.sum(axis=0)                                       # (T, 2)
    recall = values_sum[:, 0] / (values_sum[:, 0] + values_sum[:, 1])
    return recall.mean(), values
    # TODO(synk): ProcessPoolExecutor fan-out and the per-file dict lookup are host-side
    # orchestration with no Pallas equivalent; handled by batching into fixed-shape arrays.


def _ref_average_recall(proposals, labels, n_proposals, iou_thresholds, fps):
    proposals = np.asarray(proposals, np.float32)
    labels = np.asarray(labels, np.float32)
    B = proposals.shape[0]
    T = len(iou_thresholds)
    values = np.zeros((B, T, 2), np.float32)
    for b in range(B):
        prop = proposals[b][:n_proposals]
        lab = labels[b]
        nl = lab.shape[0]
        a_min = prop[:, 1] / fps
        a_max = prop[:, 2] / fps
        ious = np.zeros((prop.shape[0], nl), np.float32)
        for i in range(nl):
            bmin, bmax = lab[i, 0], lab[i, 1]
            inter = np.maximum(np.minimum(a_max, bmax) - np.maximum(a_min, bmin), 0.0)
            union = (a_max - a_min) - inter + (bmax - bmin)
            ious[:, i] = inter / union
        iou_max = ious.max(axis=0)
        for t, thr in enumerate(iou_thresholds):
            tp = float((iou_max > thr).sum())
            values[b, t] = (tp, nl - tp)
    vs = values.sum(axis=0)
    recall = vs[:, 0] / (vs[:, 0] + vs[:, 1])
    return recall.mean(), values


if __name__ == "__main__":
    B, P, L = 2, 128, 8
    n_proposals = 100
    fps = 25.0
    iou_thresholds = [0.5, 0.55, 0.6, 0.65, 0.7, 0.75, 0.8, 0.85, 0.9, 0.95]

    key = jax.random.PRNGKey(0)
    k1, k2, k3, k4, k5 = jax.random.split(key, 5)
    start_f = jax.random.uniform(k1, (B, P), minval=0.0, maxval=200.0)
    len_f = jax.random.uniform(k2, (B, P), minval=5.0, maxval=60.0)
    score = jax.random.uniform(k3, (B, P))
    proposals = jnp.stack([score, start_f, start_f + len_f], axis=-1)        # (B, P, 3)

    lstart = jax.random.uniform(k4, (B, L), minval=0.0, maxval=8.0)
    llen = jax.random.uniform(k5, (B, L), minval=0.2, maxval=2.0)
    labels = jnp.stack([lstart, lstart + llen], axis=-1)                     # (B, L, 2)

    ar, values = average_recall(proposals, labels, n_proposals, iou_thresholds, fps)
    ar = jax.block_until_ready(ar)
    values = jax.block_until_ready(values)

    ref_ar, ref_values = _ref_average_recall(proposals, labels, n_proposals,
                                             iou_thresholds, fps)
    np.testing.assert_allclose(np.asarray(values), ref_values, atol=1e-4)
    np.testing.assert_allclose(float(ar), float(ref_ar), atol=1e-5)

    print("KERNEL_OK")
</pallas_src>

<mosaic_0001>
module attributes {stable_mosaic.version = 11 : i64} {
  func.func @_ar_tp_kernel(%arg0: i32, %arg1: memref<8x1x128xf32, #tpu.memory_space<vmem>>, %arg2: memref<8x1x128xf32, #tpu.memory_space<vmem>>, %arg3: memref<8x8x1xf32, #tpu.memory_space<vmem>>, %arg4: memref<8x8x1xf32, #tpu.memory_space<vmem>>, %arg5: memref<1x1x128xf32, #tpu.memory_space<vmem>>, %arg6: memref<8x128xf32, #tpu.memory_space<vmem>>) attributes {dimension_semantics = [#tpu.dimension_semantics<parallel>], iteration_bounds = array<i64: 1>, scalar_prefetch = 0 : i64, scratch_operands = 0 : i64, tpu.core_type = #tpu.core_type<tc>, window_params = [{transform_indices = @transform_0, window_bounds = array<i64: 8, 1, 128>}, {transform_indices = @transform_1, window_bounds = array<i64: 8, 1, 128>}, {transform_indices = @transform_2, window_bounds = array<i64: 8, 8, 1>}, {transform_indices = @transform_3, window_bounds = array<i64: 8, 8, 1>}, {pipeline_mode = #tpu.pipeline_mode<synchronous>, transform_indices = @transform_4, window_bounds = array<i64: 1, 1, 128>}, {transform_indices = @transform_5, window_bounds = array<i64: 8, 128>}]} {
    %c0 = arith.constant 0 : index
    %c0_0 = arith.constant 0 : index
    %c0_1 = arith.constant 0 : index
    %0 = vector.load %arg1[%c0, %c0_0, %c0_1] : memref<8x1x128xf32, #tpu.memory_space<vmem>>, vector<8x1x128xf32>
    %cst = arith.constant 2.500000e+01 : f32
    %1 = vector.broadcast %cst : f32 to vector<8x1x128xf32>
    %2 = arith.divf %0, %1 : vector<8x1x128xf32>
    %c0_2 = arith.constant 0 : index
    %c0_3 = arith.constant 0 : index
    %c0_4 = arith.constant 0 : index
    %3 = vector.load %arg2[%c0_2, %c0_3, %c0_4] : memref<8x1x128xf32, #tpu.memory_space<vmem>>, vector<8x1x128xf32>
    %cst_5 = arith.constant 2.500000e+01 : f32
    %4 = vector.broadcast %cst_5 : f32 to vector<8x1x128xf32>
    %5 = arith.divf %3, %4 : vector<8x1x128xf32>
    %c0_6 = arith.constant 0 : index
    %c0_7 = arith.constant 0 : index
    %c0_8 = arith.constant 0 : index
    %6 = vector.load %arg3[%c0_6, %c0_7, %c0_8] : memref<8x8x1xf32, #tpu.memory_space<vmem>>, vector<8x8x1xf32>
    %c0_9 = arith.constant 0 : index
    %c0_10 = arith.constant 0 : index
    %c0_11 = arith.constant 0 : index
    %7 = vector.load %arg4[%c0_9, %c0_10, %c0_11] : memref<8x8x1xf32, #tpu.memory_space<vmem>>, vector<8x8x1xf32>
    %8 = arith.subf %5, %2 : vector<8x1x128xf32>
    %9 = arith.subf %7, %6 : vector<8x8x1xf32>
    %10 = vector.broadcast %2 : vector<8x1x128xf32> to vector<8x8x128xf32>
    %11 = vector.broadcast %6 : vector<8x8x1xf32> to vector<8x8x128xf32>
    %12 = arith.maximumf %10, %11 : vector<8x8x128xf32>
    %13 = vector.broadcast %5 : vector<8x1x128xf32> to vector<8x8x128xf32>
    %14 = vector.broadcast %7 : vector<8x8x1xf32> to vector<8x8x128xf32>
    %15 = arith.minimumf %13, %14 : vector<8x8x128xf32>
    %16 = arith.subf %15, %12 : vector<8x8x128xf32>
    %cst_12 = arith.constant 0.000000e+00 : f32
    %17 = vector.broadcast %cst_12 : f32 to vector<8x8x128xf32>
    %18 = arith.maximumf %16, %17 : vector<8x8x128xf32>
    %19 = vector.broadcast %8 : vector<8x1x128xf32> to vector<8x8x128xf32>
    %20 = vector.broadcast %9 : vector<8x8x1xf32> to vector<8x8x128xf32>
    %21 = arith.addf %19, %20 : vector<8x8x128xf32>
    %22 = arith.subf %21, %18 : vector<8x8x128xf32>
    %23 = arith.divf %18, %22 : vector<8x8x128xf32>
    %cst_13 = arith.constant dense<0xFF800000> : vector<8x8xf32>
    %24 = vector.multi_reduction <maximumf>, %23, %cst_13 [2] : vector<8x8x128xf32> to vector<8x8xf32>
    %25 = vector.shape_cast %24 : vector<8x8xf32> to vector<8x8x1xf32>
    %c0_14 = arith.constant 0 : index
    %c0_15 = arith.constant 0 : index
    %c0_16 = arith.constant 0 : index
    %26 = vector.load %arg5[%c0_14, %c0_15, %c0_16] : memref<1x1x128xf32, #tpu.memory_space<vmem>>, vector<1x1x128xf32>
    %27 = vector.broadcast %25 : vector<8x8x1xf32> to vector<8x8x128xf32>
    %28 = vector.broadcast %26 : vector<1x1x128xf32> to vector<8x8x128xf32>
    %29 = arith.cmpf ogt, %27, %28 : vector<8x8x128xf32>
    %30 = arith.extui %29 : vector<8x8x128xi1> to vector<8x8x128xi32>
    %31 = arith.sitofp %30 : vector<8x8x128xi32> to vector<8x8x128xf32>
    %cst_17 = arith.constant dense<0.000000e+00> : vector<8x128xf32>
    %32 = vector.multi_reduction <add>, %31, %cst_17 [1] : vector<8x8x128xf32> to vector<8x128xf32>
    %c0_18 = arith.constant 0 : index
    %c0_19 = arith.constant 0 : index
    %33 = vector.load %arg6[%c0_18, %c0_19] : memref<8x128xf32, #tpu.memory_space<vmem>>, vector<8x128xf32>
    tpu.vector_store %arg6[%c0_18, %c0_19], %32 {strides = array<i32>} : memref<8x128xf32, #tpu.memory_space<vmem>>, vector<8x128xf32>,
    return
  }
  func.func @transform_0(%arg0: i32) -> (i32, i32, i32) {
    %c0_i32 = arith.constant 0 : i32
    %c0_i32_0 = arith.constant 0 : i32
    %c0_i32_1 = arith.constant 0 : i32
    return %arg0, %c0_i32, %c0_i32_0 : i32, i32, i32
  }
  func.func @transform_1(%arg0: i32) -> (i32, i32, i32) {
    %c0_i32 = arith.constant 0 : i32
    %c0_i32_0 = arith.constant 0 : i32
    %c0_i32_1 = arith.constant 0 : i32
    return %arg0, %c0_i32, %c0_i32_0 : i32, i32, i32
  }
  func.func @transform_2(%arg0: i32) -> (i32, i32, i32) {
    %c0_i32 = arith.constant 0 : i32
    %c0_i32_0 = arith.constant 0 : i32
    %c0_i32_1 = arith.constant 0 : i32
    return %arg0, %c0_i32, %c0_i32_0 : i32, i32, i32
  }
  func.func @transform_3(%arg0: i32) -> (i32, i32, i32) {
    %c0_i32 = arith.constant 0 : i32
    %c0_i32_0 = arith.constant 0 : i32
    %c0_i32_1 = arith.constant 0 : i32
    return %arg0, %c0_i32, %c0_i32_0 : i32, i32, i32
  }
  func.func @transform_4(%arg0: i32) -> (i32, i32, i32) {
    %c0_i32 = arith.constant 0 : i32
    %c0_i32_0 = arith.constant 0 : i32
    %c0_i32_1 = arith.constant 0 : i32
    %c0_i32_2 = arith.constant 0 : i32
    return %c0_i32, %c0_i32_0, %c0_i32_1 : i32, i32, i32
  }
  func.func @transform_5(%arg0: i32) -> (i32, i32) {
    %c0_i32 = arith.constant 0 : i32
    %c0_i32_0 = arith.constant 0 : i32
    return %arg0, %c0_i32 : i32, i32
  }
}

</mosaic_0001>

<bundles_post_ra>
// kernel: tpu_custom_call.1
= control target key start
LH: loop header
LB: loop body
LE: loop exit
PB: predicated region body
PF: predicated region fallthrough
CT: control target
= control target key end

     0   :  { %v599_v2 = vmov 0   ;;  %s780_s0 = inlined_call_operand.vmem [shape: f32[8,1,128], index: 0, kind: input, shape index: {}]   ;;  %s781_s1 = inlined_call_operand.vmem [shape: f32[8,1,128], index: 1, kind: input, shape index: {}]   ;;  %s782_s2 = inlined_call_operand.vmem [shape: f32[8,8,1], index: 2, kind: input, shape index: {}]   ;;  %s783_s3 = inlined_call_operand.vmem [shape: f32[8,8,1], index: 3, kind: input, shape index: {}]   ;;  %s784_s4 = inlined_call_operand.vmem [shape: f32[1,1,128], index: 4, kind: input, shape index: {}]   ;;  %s785_s5 = inlined_call_operand.hbm [shape: f32[8,128], index: 5, kind: output, shape index: {}]  }
   0x1   :  { %v62_v0 = vld [vmem:[%s783_s3] sm:$0xff]  ;;  %560 = vset.pattern.permute.xlu1 %v599_v2  ;;  %559 = vset.pattern.permute.xlu0 %v599_v2  ;;  %v63_v3 = vld [vmem:[%s783_s3 + $0x8] sm:$0xff]  ;;  %v64_v5 = vld [vmem:[%s783_s3 + $0x10] sm:$0xff] }
   0x2   :  { %v54_v1 = vld [vmem:[%s782_s2] sm:$0xff]  ;;  %232 = vperm.xlu1 %560, %v62_v0   ;;  %v55_v4 = vld [vmem:[%s782_s2 + $0x8] sm:$0xff]  ;;  %v56_v6 = vld [vmem:[%s782_s2 + $0x10] sm:$0xff] }
   0x3   :  { %136 = vperm.xlu0 %559, %v54_v1   ;;  %v65_v7 = vld [vmem:[%s783_s3 + $0x18] sm:$0xff] }
   0x4   :  { %v57_v8 = vld [vmem:[%s782_s2 + $0x18] sm:$0xff] }
   0x6   :  { %237 = vperm.xlu1 %560, %v63_v3  }
   0x7   :  { %141 = vperm.xlu0 %559, %v55_v4  }
   0xa   :  { %242 = vperm.xlu1 %560, %v64_v5  }
   0xb   :  { %146 = vperm.xlu0 %559, %v56_v6  }
   0xc   :  { %10 = vsyncpa [#allocation3], 0  ;;  %v66_v9 = vld [vmem:[%s783_s3 + $0x20] sm:$0xff]  ;;  %v67_v11 = vld [vmem:[%s783_s3 + $0x28] sm:$0xff]  ;;  %v78_v13 = vsub.f32 %v62_v0, %v54_v1  ;;  %v79_v14 = vsub.f32 %v63_v3, %v55_v4  ;;  %v80_v17 = vsub.f32 %v64_v5, %v56_v6  ;;  %v81_v19 = vsub.f32 %v65_v7, %v57_v8 }
   0xd   :  { %v58_v10 = vld [vmem:[%s782_s2 + $0x20] sm:$0xff]  ;;  %v59_v12 = vld [vmem:[%s782_s2 + $0x28] sm:$0xff]  ;;  %v68_v15 = vld [vmem:[%s783_s3 + $0x30] sm:$0xff]  ;;  %v94_v25 = vlaneseq  ;;  %vm517_vm8 = vcmask 1041409   ;;  %vm519_vm9 = vcmask 1042434   ;;  %vm521_vm10 = vcmask 1043459  }
   0xe   :  { %247 = vperm.xlu1 %560, %v65_v7   ;;  %v60_v16 = vld [vmem:[%s782_s2 + $0x30] sm:$0xff]  ;;  %v61_v18 = vld [vmem:[%s782_s2 + $0x38] sm:$0xff]  ;;  %v82_v21 = vsub.f32 %v66_v9, %v58_v10  ;;  %v83_v22 = vsub.f32 %v67_v11, %v59_v12  ;;  %v38_v29 = vld [vmem:[%s781_s1] sm:$0x1]  ;;  %vm523_vm11 = vcmask 1044484   ;;  %vm525_vm12 = vcmask 1045509  }
   0xf   :  { %151 = vperm.xlu0 %559, %v57_v8   ;;  %v69_v20 = vld [vmem:[%s783_s3 + $0x38] sm:$0xff]  ;;  %v84_v23 = vsub.f32 %v68_v15, %v60_v16  ;;  %v95_v28 = vshrl.u32 %v94_v25, 7  ;;  %v21_v32 = vld [vmem:[%s780_s0] sm:$0x1]  ;;  %v39_v33 = vld [vmem:[%s781_s1 + $0x1] sm:$0x1] }
  0x10   :  { %v85_v24 = vsub.f32 %v69_v20, %v61_v18  ;;  %v22_v34 = vld [vmem:[%s780_s0 + $0x1] sm:$0x1]  ;;  %v46_v36 = vmul.f32 0.04, %v38_v29  ;;  %v30_v37 = vmul.f32 0.04, %v21_v32 }
  0x11   :  { %v692_v35 = vsub.s32 0, %v95_v28  ;;  %v47_v38 = vmul.f32 0.04, %v39_v33  ;;  %v31_v39 = vmul.f32 0.04, %v22_v34  ;;  %vm527_vm13 = vcmask 1046534  }
  0x12   :  { %252 = vperm.xlu1 %560, %v66_v9   ;;  %v40_v48 = vld [vmem:[%s781_s1 + $0x2] sm:$0x1]  ;;  %v41_v50 = vld [vmem:[%s781_s1 + $0x3] sm:$0x1]  ;;  %v70_v61 = vsub.f32 %v46_v36, %v30_v37  ;;  %v42_v0 = vld [vmem:[%s781_s1 + $0x4] sm:$0x1] }
  0x13   :  { %156 = vperm.xlu0 %559, %v58_v10   ;;  %v193_v42 = vrot.slane %v46_v36, %v692_v35  ;;  %v97_v43 = vrot.slane %v30_v37, %v692_v35  ;;  %v197_v44 = vrot.slane %v47_v38, %v692_v35  ;;  %v101_v45 = vrot.slane %v31_v39, %v692_v35  ;;  %v23_v49 = vld [vmem:[%s780_s0 + $0x2] sm:$0x1]  ;;  %v24_v55 = vld [vmem:[%s780_s0 + $0x3] sm:$0x1]  ;;  %v25_v1 = vld [vmem:[%s780_s0 + $0x4] sm:$0x1] }
  0x14   :  { %v48_v58 = vmul.f32 0.04, %v40_v48  ;;  %v32_v59 = vmul.f32 0.04, %v23_v49  ;;  %v71_v60 = vsub.f32 %v47_v38, %v31_v39  ;;  %v49_v62 = vmul.f32 0.04, %v41_v50 }
  0x15   :  { %v33_v63 = vmul.f32 0.04, %v24_v55  ;;  %v43_v5 = vld [vmem:[%s781_s1 + $0x5] sm:$0x1]  ;;  %v45_v29 = vld [vmem:[%s781_s1 + $0x7] sm:$0x1] }
  0x16   :  { %257 = vperm.xlu1 %560, %v67_v11   ;;  %v201_v7 = vrot.slane %v48_v58, %v692_v35  ;;  %v105_v8 = vrot.slane %v32_v59, %v692_v35  ;;  %v26_v9 = vld [vmem:[%s780_s0 + $0x5] sm:$0x1]  ;;  %v309_v10 = vrot.slane %v71_v60, %v692_v35  ;;  %v305_v11 = vrot.slane %v70_v61, %v692_v35  ;;  %v28_v37 = vld [vmem:[%s780_s0 + $0x7] sm:$0x1] }
  0x17   :  { %161 = vperm.xlu0 %559, %v59_v12   ;;  %v50_v12 = vmul.f32 0.04, %v42_v0  ;;  %v73_v38 = vsub.f32 %v49_v62, %v33_v63  ;;  %v37_v50 = vmul.f32 0.04, %v28_v37  ;;  %vm529_vm14 = vcmask 1047559  }
  0x1a   :  { %349 = vperm.xlu1 %560, %v79_v14   ;;  %v205_v14 = vrot.slane %v49_v62, %v692_v35 }
  0x1b   :  { %344 = vperm.xlu0 %559, %v78_v13   ;;  %v34_v13 = vmul.f32 0.04, %v25_v1 }
  0x1d   :  { %v74_v55 = vsub.f32 %v50_v12, %v34_v13 }
  0x1e   :  { %262 = vperm.xlu1 %560, %v68_v15   ;;  %v109_v15 = vrot.slane %v33_v63, %v692_v35 }
  0x1f   :  { %166 = vperm.xlu0 %559, %v60_v16   ;;  %v51_v16 = vmul.f32 0.04, %v43_v5 }
  0x21   :  { %v213_v39 = vrot.slane %v51_v16, %v692_v35 }
  0x22   :  { %171 = vperm.xlu1 %560, %v61_v18  }
  0x23   :  { %354 = vperm.xlu0 %559, %v80_v17   ;;  %v44_v17 = vld [vmem:[%s781_s1 + $0x6] sm:$0x1] }
  0x24   :  { %v52_v32 = vmul.f32 0.04, %v44_v17 }
  0x26   :  { %359 = vperm.xlu1 %560, %v81_v19  }
  0x27   :  { %267 = vperm.xlu0 %559, %v69_v20   ;;  %v35_v20 = vmul.f32 0.04, %v26_v9 }
  0x2a   :  { %369 = vperm.xlu1 %560, %v83_v22  }
  0x2b   :  { %364 = vperm.xlu0 %559, %v82_v21  }
  0x2e   :  { %379 = vperm.xlu1 %560, %v85_v24   ;;  %v72_v24 = vsub.f32 %v48_v58, %v32_v59 }
  0x2f   :  { %374 = vperm.xlu0 %559, %v84_v23   ;;  %v27_v23 = vld [vmem:[%s780_s0 + $0x6] sm:$0x1] }
  0x30   :  { %v36_v36 = vmul.f32 0.04, %v27_v23 }
  0x7d   :  { %v233_v26 = vpop.permute.xlu1 %232 }
  0x7e   :  { %v137_v27 = vpop.permute.xlu0 %136  ;;  %v270_v51 = vmin.f32 %v193_v42, %v233_v26 }
  0x7f   :  { %v174_v52 = vmax.f32 %v97_v43, %v137_v27  ;;  %v313_v43 = vrot.slane %v72_v24, %v692_v35 }
  0x81   :  { %v238_v30 = vpop.permute.xlu1 %237  ;;  %v278_v2 = vsub.f32 %v270_v51, %v174_v52  ;;  %v75_v51 = vsub.f32 %v51_v16, %v35_v20  ;;  %v217_v52 = vrot.slane %v52_v32, %v692_v35 }
  0x82   :  { %v142_v31 = vpop.permute.xlu0 %141  ;;  %v271_v53 = vmin.f32 %v197_v44, %v238_v30  ;;  %v209_v30 = vrot.slane %v50_v12, %v692_v35  ;;  %v53_v44 = vmul.f32 0.04, %v45_v29 }
  0x83   :  { %v175_v54 = vmax.f32 %v101_v45, %v142_v31  ;;  %v739_v18 = vmax.f32 %v278_v2, 0.0  ;;  %v113_v31 = vrot.slane %v34_v13, %v692_v35  ;;  %v125_v2 = vrot.slane %v37_v50, %v692_v35 }
  0x84   :  { %v221_v1 = vrot.slane %v53_v44, %v692_v35 }
  0x85   :  { %v243_v40 = vpop.permute.xlu1 %242  ;;  %v279_v3 = vsub.f32 %v271_v53, %v175_v54  ;;  %v121_v53 = vrot.slane %v36_v36, %v692_v35  ;;  %v317_v54 = vrot.slane %v73_v38, %v692_v35 }
  0x86   :  { %v147_v41 = vpop.permute.xlu0 %146  ;;  %v272_v25 = vmin.f32 %v201_v7, %v243_v40  ;;  %v117_v40 = vrot.slane %v35_v20, %v692_v35  ;;  %v321_v7 = vrot.slane %v74_v55, %v692_v35  ;;  %v547_v55 = vld [vmem:[%s784_s4] ss:$0 sm:$0xff]  ;;  %s601_s4 = smov [#allocation2]  }
  0x87   :  { %v741_v19 = vmax.f32 %v279_v3, 0.0  ;;  %v176_v26 = vmax.f32 %v105_v8, %v147_v41  ;;  %v325_v3 = vrot.slane %v75_v51, %v692_v35  ;;  %v77_v8 = vsub.f32 %v53_v44, %v37_v50  ;;  %s539_s28 = sshll.u32 %s601_s4, 4  ;;  %s540_s28 = int_to_ptr.vmem [resolvable:$true] %s539_s28 }
  0x88   :  { %s577_s29 = scalar_lea.vmem %s540_s28, 128  ;;  %p582_p1 = scmp.lt.s32.totalorder %s540_s28, %s540_s28 }
  0x89   :  { %v698_v46 = vpop.permute.xlu1 %247  ;;  %v280_v45 = vsub.f32 %v272_v25, %v176_v26  ;;  %v333_v17 = vrot.slane %v77_v8, %v692_v35  ;;  %p578_p0 = scmp.ne.s32.totalorder %s540_s28, %s577_s29  ;;  %p583_p2 = scmp.lt.s32.totalorder %s577_s29, %s577_s29 }
  0x8a   :  { %v700_v47 = vpop.permute.xlu0 %151  ;;  %v273_v48 = vmin.f32 %v205_v14, %v698_v46 }
  0x8b   :  { %v177_v49 = vmax.f32 %v109_v15, %v700_v47  ;;  %v288_v47 = vmax.f32 %v280_v45, 0.0  ;;  %p584_p3 = por %p583_p2, %p582_p1 }
  0x8d   :  { %v714_v56 = vpop.permute.xlu1 %252  ;;  %v281_v63 = vsub.f32 %v273_v48, %v177_v49  ;;  %p585_p4 = pnand %p584_p3, %p578_p0 }
  0x8e   :  { %v716_v57 = vpop.permute.xlu0 %156  ;;  %v274_v58 = vmin.f32 %v209_v30, %v714_v56  ;;  %v76_v56 = vsub.f32 %v52_v32, %v36_v36 }
  0x8f   :  { %v178_v59 = vmax.f32 %v113_v31, %v716_v57  ;;  %v289_v12 = vmax.f32 %v281_v63, 0.0 }
  0x90   :  { %v329_v25 = vrot.slane %v76_v56, %v692_v35 }
  0x91   :  { %v258_v4 = vpop.permute.xlu1 %257  ;;  %v282_v9 = vsub.f32 %v274_v58, %v178_v59 }
  0x92   :  { %v162_v6 = vpop.permute.xlu0 %161  ;;  %v275_v60 = vmin.f32 %v213_v39, %v258_v4 }
  0x93   :  { %v179_v61 = vmax.f32 %v117_v40, %v162_v6  ;;  %v290_v20 = vmax.f32 %v282_v9, 0.0 }
  0x95   :  { %v350_v21 = vpop.permute.xlu1 %349  ;;  %v283_v57 = vsub.f32 %v275_v60, %v179_v61  ;;  %v600_v60 = vmov 0.0  }
  0x96   :  { %v345_v22 = vpop.permute.xlu0 %344  ;;  %v383_v27 = vadd.f32 %v350_v21, %v309_v10 }
  0x97   :  { %v382_v28 = vadd.f32 %v345_v22, %v305_v11  ;;  %v291_v21 = vmax.f32 %v283_v57, 0.0 }
  0x98   :  { %v391_v33 = vsub.f32 %v383_v27, %v741_v19 }
  0x99   :  { %v390_v34 = vsub.f32 %v382_v28, %v739_v18  ;;  %v263_v41 = vpop.permute.xlu1 %262 }
  0x9a   :  { %v167_v42 = vpop.permute.xlu0 %166  ;;  %561 = vrcp.f32 %v391_v33  ;;  %v276_v4 = vmin.f32 %v217_v52, %v263_v41 }
  0x9b   :  { %563 = vrcp.f32 %v390_v34  ;;  %v180_v6 = vmax.f32 %v121_v53, %v167_v42 }
  0x9d   :  { %v172_v46 = vpop.permute.xlu1 %171  ;;  %v284_v22 = vsub.f32 %v276_v4, %v180_v6 }
  0x9e   :  { %v355_v62 = vpop.permute.xlu0 %354  ;;  %v181_v15 = vmax.f32 %v125_v2, %v172_v46 }
  0x9f   :  { %v384_v0 = vadd.f32 %v355_v62, %v313_v43  ;;  %v292_v34 = vmax.f32 %v284_v22, 0.0 }
  0xa1   :  { %v392_v5 = vsub.f32 %v384_v0, %v288_v47  ;;  %v360_v10 = vpop.permute.xlu1 %359 }
  0xa2   :  { %v268_v11 = vpop.permute.xlu0 %267  ;;  %v385_v13 = vadd.f32 %v360_v10, %v317_v54 }
  0xa3   :  { %565 = vrcp.f32 %v392_v5  ;;  %v277_v14 = vmin.f32 %v221_v1, %v268_v11 }
  0xa4   :  { %v393_v16 = vsub.f32 %v385_v13, %v289_v12 }
  0xa5   :  { %v370_v23 = vpop.permute.xlu1 %369  ;;  %v285_v26 = vsub.f32 %v277_v14, %v181_v15 }
  0xa6   :  { %v365_v24 = vpop.permute.xlu0 %364  ;;  %567 = vrcp.f32 %v393_v16  ;;  %v387_v27 = vadd.f32 %v370_v23, %v325_v3 }
  0xa7   :  { %v386_v28 = vadd.f32 %v365_v24, %v321_v7  ;;  %v562_v29 = vpop.eup %561  ;;  %v293_v39 = vmax.f32 %v285_v26, 0.0 }
  0xa8   :  { %v564_v30 = vpop.eup %563  ;;  %v395_v31 = vsub.f32 %v387_v27, %v291_v21  ;;  %v401_v33 = vmul.f32 %v562_v29, %v741_v19 }
  0xa9   :  { %v394_v32 = vsub.f32 %v386_v28, %v290_v20  ;;  %v380_v36 = vpop.permute.xlu1 %379  ;;  %v399_v38 = vmul.f32 %v564_v30, %v739_v18 }
  0xaa   :  { %v375_v37 = vpop.permute.xlu0 %374  ;;  %569 = vrcp.f32 %v395_v31  ;;  %v389_v40 = vadd.f32 %v380_v36, %v333_v17  ;;  %416 = vmax.xlane.f32.xlu1 %v401_v33 }
  0xab   :  { %v388_v41 = vadd.f32 %v375_v37, %v329_v25  ;;  %571 = vrcp.f32 %v394_v32  ;;  %414 = vmax.xlane.f32.xlu0 %v399_v38 }
  0xac   :  { %v397_v35 = vsub.f32 %v389_v40, %v293_v39 }
  0xad   :  { %v396_v42 = vsub.f32 %v388_v41, %v292_v34 }
  0xae   :  { %573 = vrcp.f32 %v397_v35 }
  0xaf   :  { %575 = vrcp.f32 %v396_v42 }
  0xb0   :  { %v566_v43 = vpop.eup %565 }
  0xb1   :  { %v403_v44 = vmul.f32 %v566_v43, %v288_v47 }
  0xb3   :  { %418 = vmax.xlane.f32.xlu0 %v403_v44  ;;  %v568_v19 = vpop.eup %567 }
  0xb4   :  { %v405_v45 = vmul.f32 %v568_v19, %v289_v12 }
  0xb7   :  { %420 = vmax.xlane.f32.xlu0 %v405_v45  ;;  %v570_v48 = vpop.eup %569 }
  0xb8   :  { %v572_v49 = vpop.eup %571  ;;  %v409_v18 = vmul.f32 %v570_v48, %v291_v21 }
  0xb9   :  { %v407_v50 = vmul.f32 %v572_v49, %v290_v20 }
  0xbb   :  { %424 = vmax.xlane.f32.xlu0 %v409_v18  ;;  %v574_v51 = vpop.eup %573  ;;  %422 = vmax.xlane.f32.xlu1 %v407_v50 }
  0xbc   :  { %v576_v52 = vpop.eup %575  ;;  %v413_v53 = vmul.f32 %v574_v51, %v293_v39 }
  0xbd   :  { %v411_v54 = vmul.f32 %v576_v52, %v292_v34 }
  0xbf   :  { %428 = vmax.xlane.f32.xlu0 %v413_v53  ;;  %426 = vmax.xlane.f32.xlu1 %v411_v54 }
 0x133   :  { %v417_v58 = vpop.xlane.xlu1 %416 }
 0x134   :  { %vm438_vm0 = vcmp.gt.f32.partialorder %v417_v58, %v547_v55  ;;  %v415_v59 = vpop.xlane.xlu0 %414 }
 0x135   :  { %v549_v61 = vsel %vm438_vm0, 1.0, %v600_v60  ;;  %vm437_vm1 = vcmp.gt.f32.partialorder %v415_v59, %v547_v55 }
 0x136   :  { %v548_v46 = vsel %vm437_vm1, 1.0, %v600_v60  ;;  %v467_v62 = vrot.slane %v549_v61, 4 }
 0x137   :  { %v461_v47 = vrot.slane %v548_v46, 4 }
 0x138   :  { %v468_v63 = vadd.f32 %v549_v61, %v467_v62 }
 0x139   :  { %v462_v1 = vadd.f32 %v548_v46, %v461_v47 }
 0x13a   :  { %v469_v5 = vrot.slane %v468_v63, 2 }
 0x13b   :  { %v463_v8 = vrot.slane %v462_v1, 2 }
 0x13c   :  { %v419_v0 = vpop.xlane.xlu0 %418  ;;  %v470_v6 = vadd.f32 %v469_v5, %v468_v63 }
 0x13d   :  { %vm439_vm2 = vcmp.gt.f32.partialorder %v419_v0, %v547_v55  ;;  %v464_v11 = vadd.f32 %v463_v8, %v462_v1 }
 0x13e   :  { %v550_v2 = vsel %vm439_vm2, 1.0, %v600_v60  ;;  %v471_v21 = vrot.slane %v470_v6, 1 }
 0x13f   :  { %v473_v3 = vrot.slane %v550_v2, 4  ;;  %v465_v24 = vrot.slane %v464_v11, 1 }
 0x140   :  { %v421_v7 = vpop.xlane.xlu0 %420  ;;  %v472_v38 = vadd.f32 %v471_v21, %v470_v6 }
 0x141   :  { %v474_v56 = vadd.f32 %v550_v2, %v473_v3  ;;  %vm440_vm3 = vcmp.gt.f32.partialorder %v421_v7, %v547_v55  ;;  %v466_v39 = vadd.f32 %v465_v24, %v464_v11 }
 0x142   :  { %v551_v9 = vsel %vm440_vm3, 1.0, %v600_v60 }
 0x143   :  { %v475_v57 = vrot.slane %v474_v56, 2  ;;  %v479_v4 = vrot.slane %v551_v9, 4  ;;  %v518_v18 = vsel %vm517_vm8, %v472_v38, %v466_v39 }
 0x144   :  { %v425_v10 = vpop.xlane.xlu0 %424  ;;  %v423_v13 = vpop.xlane.xlu1 %422 }
 0x145   :  { %v480_v12 = vadd.f32 %v551_v9, %v479_v4  ;;  %vm442_vm4 = vcmp.gt.f32.partialorder %v425_v10, %v547_v55  ;;  %v476_v14 = vadd.f32 %v475_v57, %v474_v56  ;;  %vm441_vm5 = vcmp.gt.f32.partialorder %v423_v13, %v547_v55 }
 0x146   :  { %v553_v15 = vsel %vm442_vm4, 1.0, %v600_v60  ;;  %v552_v17 = vsel %vm441_vm5, 1.0, %v600_v60 }
 0x147   :  { %v481_v16 = vrot.slane %v480_v12, 2  ;;  %v491_v20 = vrot.slane %v553_v15, 4  ;;  %v485_v22 = vrot.slane %v552_v17, 4  ;;  %v477_v28 = vrot.slane %v476_v14, 1 }
 0x148   :  { %v429_v23 = vpop.xlane.xlu0 %428  ;;  %v427_v27 = vpop.xlane.xlu1 %426 }
 0x149   :  { %v482_v25 = vadd.f32 %v481_v16, %v480_v12  ;;  %v492_v26 = vadd.f32 %v553_v15, %v491_v20  ;;  %vm444_vm6 = vcmp.gt.f32.partialorder %v429_v23, %v547_v55  ;;  %v486_v29 = vadd.f32 %v552_v17, %v485_v22 }
 0x14a   :  { %vm443_vm7 = vcmp.gt.f32.partialorder %v427_v27, %v547_v55  ;;  %v555_v30 = vsel %vm444_vm6, 1.0, %v600_v60  ;;  %v478_v41 = vadd.f32 %v477_v28, %v476_v14 }
 0x14b   :  { %v483_v31 = vrot.slane %v482_v25, 1  ;;  %v493_v32 = vrot.slane %v492_v26, 2  ;;  %v554_v33 = vsel %vm443_vm7, 1.0, %v600_v60  ;;  %v487_v34 = vrot.slane %v486_v29, 2 }
 0x14c   :  { %v497_v36 = vrot.slane %v554_v33, 4  ;;  %v503_v37 = vrot.slane %v555_v30, 4  ;;  %v520_v50 = vsel %vm519_vm9, %v478_v41, %v518_v18 }
 0x14d   :  { %v494_v40 = vadd.f32 %v493_v32, %v492_v26  ;;  %v488_v35 = vadd.f32 %v487_v34, %v486_v29  ;;  %v484_v44 = vadd.f32 %v483_v31, %v482_v25 }
 0x14e   :  { %v498_v42 = vadd.f32 %v554_v33, %v497_v36  ;;  %v504_v43 = vadd.f32 %v555_v30, %v503_v37 }
 0x14f   :  { %v495_v19 = vrot.slane %v494_v40, 1  ;;  %v489_v45 = vrot.slane %v488_v35, 1  ;;  %v522_v55 = vsel %vm521_vm10, %v484_v44, %v520_v50 }
 0x150   :  { %v499_v48 = vrot.slane %v498_v42, 2  ;;  %v505_v49 = vrot.slane %v504_v43, 2 }
 0x151   :  { %v490_v51 = vadd.f32 %v489_v45, %v488_v35  ;;  %v496_v54 = vadd.f32 %v495_v19, %v494_v40 }
 0x152   :  { %v500_v52 = vadd.f32 %v499_v48, %v498_v42  ;;  %v506_v53 = vadd.f32 %v505_v49, %v504_v43 }
 0x153   :  { %v524_v60 = vsel %vm523_vm11, %v490_v51, %v522_v55 }
 0x154   :  { %v501_v58 = vrot.slane %v500_v52, 1  ;;  %v507_v59 = vrot.slane %v506_v53, 1  ;;  %v526_v62 = vsel %vm525_vm12, %v496_v54, %v524_v60 }
 0x156   :  { %v502_v61 = vadd.f32 %v501_v58, %v500_v52  ;;  %v508_v46 = vadd.f32 %v507_v59, %v506_v53 }
 0x158   :  { %v528_v47 = vsel %vm527_vm13, %v502_v61, %v526_v62 }
 0x159   :  { %v530_v63 = vsel %vm529_vm14, %v508_v46, %v528_v47 }
 0x15a   :  { %532 = vst [vmem:[#allocation2] sm:$0xff] %v530_v63 }
 0x15b   :  { %588 = shalt.err (!%p585_p4)
}
 0x15c   :  { %542 = dma.vmem_to_hbm [thread:$0]  %s540_s28, 128, %s785_s5, [#allocation3]  }
 0x15d   :  { %597 = dma.done.wait [#allocation3], 128  }
 0x15e   :  { %598 = vsyncadd [#allocation3], 4294967168 }
 0x15f   :  { %546 = vsyncpa [#allocation3], 1 }

</bundles_post_ra>
